<compile_context>
chip_gen: v7x
topology: tpu7x:2x2x1
jax: 0.10.0
libtpu: 0.0.40
codegen_flags: <defaults>
</compile_context>

<pallas_src>
from copy import deepcopy

import numpy as np
import jax
import jax.numpy as jnp
from jax.experimental import pallas as pl
from jax.experimental.pallas import tpu as pltpu


def _round_up(v, m):
    return ((v + m - 1) // m) * m


# ----------------------------------------------------------------------------
# Reference helper (identical to the PyTorch module's filter_terms).
# ----------------------------------------------------------------------------
def filter_terms(term_state, children_term_map):
    result_list = []
    for term_name, state in zip(term_state.keys(), term_state.values()):
        if state == 0:
            children_term_list = children_term_map[term_name]
            child_all_ready = True
            for child in children_term_list:
                if term_state[child] == 0:
                    child_all_ready = False
                    break
            if child_all_ready:
                result_list.append(term_name)
    return result_list


# ----------------------------------------------------------------------------
# Synthetic, deterministic term node-layer parameters.
#   trans   = tanh(concat(inputs) @ W + b)        (B, H)
#   predict = tanh(trans @ Wa + ba)               (B, 1)
# ----------------------------------------------------------------------------
class NodeLayer:
    def __init__(self, key, in_dim, hidden_dim):
        k1, k2, k3, k4 = jax.random.split(key, 4)
        self.W = 0.1 * jax.random.normal(k1, (in_dim, hidden_dim), jnp.float32)
        self.b = 0.1 * jax.random.normal(k2, (1, hidden_dim), jnp.float32)
        self.Wa = 0.1 * jax.random.normal(k3, (hidden_dim, 1), jnp.float32)
        self.ba = 0.1 * jax.random.normal(k4, (1, 1), jnp.float32)


# ----------------------------------------------------------------------------
# Pallas kernel: whole DAG in one gridded call (grid axis = topo-ordered term).
# ----------------------------------------------------------------------------
def _build_dag_kernel(b_pad, gpad, h_pad, maxc):
    din_pad = gpad + maxc * h_pad

    def kernel(child_ids_ref,   # SMEM (n_terms, maxc) int32 — child slot ids
               gene_ref,        # VMEM (b_pad, gpad)          — this term's genes
               w_ref,           # VMEM (1, din_pad, h_pad)    — this term's padded W
               b_ref,           # VMEM (1, 1, h_pad)
               wa_ref,          # VMEM (1, 1, h_pad)          — Wa row (padded)
               ba_ref,          # VMEM (1, 1, 1)
               trans_ref,       # VMEM ((n_terms+1)*b_pad, h_pad)  resident slab
               pred_ref,        # VMEM (b_pad, nt_pad)             resident slab
               xin_ref):        # VMEM scratch (b_pad, din_pad)
        t = pl.program_id(0)

        @pl.when(t == 0)
        def _init():
            # Zero the resident slabs once; the last trans slot stays all-zero
            # and is what "missing child" slots in child_ids point at.
            trans_ref[...] = jnp.zeros_like(trans_ref)
            pred_ref[...] = jnp.zeros_like(pred_ref)

        # Assemble this term's input block: [genes | child_0 | ... | child_{maxc-1}].
        xin_ref[:, 0:gpad] = gene_ref[...]
        for c in range(maxc):                       # static unroll, maxc small
            slot = child_ids_ref[t, c]              # child topo slot (or zero slot)
            row0 = pl.multiple_of(slot * b_pad, 8)  # 8-aligned sublane gather
            xin_ref[:, gpad + c * h_pad:gpad + (c + 1) * h_pad] = (
                trans_ref[pl.ds(row0, b_pad), :])

        # trans = tanh(x @ W + b): one MXU matmul (K = din_pad, N = h_pad=128).
        h = jnp.tanh(
            jnp.dot(xin_ref[...], w_ref[0],
                    preferred_element_type=jnp.float32) + b_ref[0])
        dst = pl.multiple_of(t * b_pad, 8)
        trans_ref[pl.ds(dst, b_pad), :] = h         # lane-dense (…,128) store

        # predict = tanh(trans @ Wa + ba) with N == 1: VPU multiply + lane
        # reduction (padded lanes of h and wa are exactly zero), then scatter
        # into lane t of the resident predict slab (one-vreg masked RMW —
        # avoids a width-1 dynamic lane store).
        p = jnp.tanh(jnp.sum(h * wa_ref[0], axis=-1, keepdims=True) + ba_ref[0])
        lane = jax.lax.broadcasted_iota(jnp.int32, pred_ref.shape, 1)
        pred_ref[...] = jnp.where(lane == t, p, pred_ref[...])

    return kernel


# ----------------------------------------------------------------------------
# CombineNode: same forward semantics as the PyTorch module, one Pallas call.
# ----------------------------------------------------------------------------
class CombineNode:
    def __init__(self, term_node_layers, term_state, children_term_map,
                 children_gene_map):
        self.term_node_layers = term_node_layers
        self.children_term_map = children_term_map
        self.children_gene_map = children_gene_map
        self.term_state = term_state

        # Static DAG metadata (host side, done once).
        self.topo_order = self._topological_order()
        self._static = self._pack_static() if self.topo_order else None
        self._call_cache = {}   # keyed by padded batch size

    # Replicates the reference while/filter_terms loop to get the processing
    # order (waves flattened); only terms that ever become "ready" appear.
    def _topological_order(self):
        term_states = deepcopy(self.term_state)
        order = []
        ready_term = filter_terms(term_states, self.children_term_map)
        while len(ready_term) != 0:
            ready_term = filter_terms(term_states, self.children_term_map)
            for term_name in ready_term:
                order.append(term_name)
                term_states[term_name] = 1
        return order

    # Pack per-term weights into stacked, padded slabs + child-slot id table.
    def _pack_static(self):
        order = self.topo_order
        n_terms = len(order)
        pos = {name: i for i, name in enumerate(order)}

        hidden = int(next(iter(self.term_node_layers.values())).Wa.shape[0])
        n_children = {n: len(self.children_term_map[n]) for n in order}
        # Gene count per term inferred from W: in_dim = n_genes + n_children*H.
        n_genes = {
            n: int(self.term_node_layers[n].W.shape[0]) - n_children[n] * hidden
            for n in order
        }

        h_pad = _round_up(max(hidden, 1), 128)          # lane-pad hidden
        gpad = _round_up(max(max(n_genes.values()), 1), 128)
        maxc = max(max(n_children.values()), 1)
        nt_pad = _round_up(n_terms, 128)                # lane-dense predict slab
        din_pad = gpad + maxc * h_pad
        zero_slot = n_terms                             # all-zero trans slot

        w_all = np.zeros((n_terms, din_pad, h_pad), np.float32)
        b_all = np.zeros((n_terms, 1, h_pad), np.float32)
        wa_all = np.zeros((n_terms, 1, h_pad), np.float32)
        ba_all = np.zeros((n_terms, 1, 1), np.float32)
        child_ids = np.full((n_terms, maxc), zero_slot, np.int32)

        for t, name in enumerate(order):
            layer = self.term_node_layers[name]
            w = np.asarray(layer.W, np.float32)
            ng = n_genes[name]
            if ng > 0:
                w_all[t, :ng, :hidden] = w[:ng, :]
            for c, child in enumerate(self.children_term_map[name]):
                r0 = gpad + c * h_pad
                w_all[t, r0:r0 + hidden, :hidden] = (
                    w[ng + c * hidden: ng + (c + 1) * hidden, :])
                child_ids[t, c] = pos[child]
            b_all[t, 0, :hidden] = np.asarray(layer.b, np.float32).reshape(-1)
            wa_all[t, 0, :hidden] = np.asarray(layer.Wa, np.float32).reshape(-1)
            ba_all[t, 0, 0] = np.asarray(layer.ba, np.float32).reshape(-1)[0]

        return dict(
            n_terms=n_terms, hidden=hidden, h_pad=h_pad, gpad=gpad, maxc=maxc,
            nt_pad=nt_pad, din_pad=din_pad, n_genes=n_genes,
            w_all=jnp.asarray(w_all), b_all=jnp.asarray(b_all),
            wa_all=jnp.asarray(wa_all), ba_all=jnp.asarray(ba_all),
            child_ids=jnp.asarray(child_ids),
        )

    def _get_call(self, b_pad):
        if b_pad in self._call_cache:
            return self._call_cache[b_pad]
        s = self._static
        n_terms = s["n_terms"]
        gpad, h_pad, maxc = s["gpad"], s["h_pad"], s["maxc"]
        din_pad, nt_pad = s["din_pad"], s["nt_pad"]

        kernel = _build_dag_kernel(b_pad, gpad, h_pad, maxc)

        grid_spec = pltpu.PrefetchScalarGridSpec(
            num_scalar_prefetch=1,            # child-slot id table -> SMEM
            grid=(n_terms,),
            in_specs=[
                # This term's gene block (pipelined one term ahead).
                pl.BlockSpec((b_pad, gpad), lambda t, cids: (t, 0)),
                # This term's padded weight tile (double-buffered by default).
                pl.BlockSpec((1, din_pad, h_pad), lambda t, cids: (t, 0, 0)),
                pl.BlockSpec((1, 1, h_pad), lambda t, cids: (t, 0, 0)),  # b
                pl.BlockSpec((1, 1, h_pad), lambda t, cids: (t, 0, 0)),  # Wa row
                pl.BlockSpec((1, 1, 1), lambda t, cids: (t, 0, 0)),      # ba
            ],
            out_specs=(
                # Resident lane-dense trans slab (constant block index =>
                # stays in VMEM across the whole grid, written back once).
                pl.BlockSpec(((n_terms + 1) * b_pad, h_pad),
                             lambda t, cids: (0, 0)),
                # Resident lane-dense predict slab (one lane per term).
                pl.BlockSpec((b_pad, nt_pad), lambda t, cids: (0, 0)),
            ),
            scratch_shapes=[pltpu.VMEM((b_pad, din_pad), jnp.float32)],
        )

        call = pl.pallas_call(
            kernel,
            grid_spec=grid_spec,
            out_shape=(
                jax.ShapeDtypeStruct(((n_terms + 1) * b_pad, h_pad),
                                     jnp.float32),
                jax.ShapeDtypeStruct((b_pad, nt_pad), jnp.float32),
            ),
            compiler_params=pltpu.CompilerParams(
                # Term axis is a dependency chain -> must be sequential.
                dimension_semantics=("arbitrary",),
                vmem_limit_bytes=32 * 1024 * 1024,
            ),
        )
        self._call_cache[b_pad] = call
        return call

    def forward(self, x):
        if not self.topo_order:
            return {}
        s = self._static
        order = self.topo_order
        n_terms, gpad = s["n_terms"], s["gpad"]

        # Infer batch size from any gene input.
        batch = None
        for name in order:
            if s["n_genes"][name] > 0 and name in x:
                batch = int(x[name].shape[0])
                break
        if batch is None:
            raise ValueError("could not infer batch size from gene inputs")
        b_pad = _round_up(max(batch, 1), 8)

        # Pack gene inputs into one padded lane-dense slab (stays on device).
        gene_slab = jnp.zeros((n_terms * b_pad, gpad), jnp.float32)
        for t, name in enumerate(order):
            ng = s["n_genes"][name]
            if ng > 0:
                xv = jnp.asarray(x[name], jnp.float32)
                gene_slab = gene_slab.at[
                    t * b_pad:t * b_pad + batch, :ng].set(xv)

        call = self._get_call(b_pad)
        _trans_slab, pred_slab = call(
            s["child_ids"], gene_slab,
            s["w_all"], s["b_all"], s["wa_all"], s["ba_all"])

        predict_out = {}
        for t, name in enumerate(order):
            predict_out[name] = pred_slab[:batch, t:t + 1]
        return predict_out


# ----------------------------------------------------------------------------
# Pure-JAX replica of the reference forward (for correctness checking).
# ----------------------------------------------------------------------------
def reference_forward(model, x):
    trans_out, predict_out = {}, {}
    term_states = deepcopy(model.term_state)
    ready_term = filter_terms(term_states, model.children_term_map)
    while len(ready_term) != 0:
        ready_term = filter_terms(term_states, model.children_term_map)
        for term_name in ready_term:
            children_term_list = model.children_term_map[term_name]
            children_gene_list = model.children_gene_map[term_name]
            layer = model.term_node_layers[term_name]
            if len(children_term_list) > 0:
                previous_out = jnp.concatenate(
                    [trans_out[c] for c in children_term_list], axis=1)
                if len(children_gene_list) > 0:
                    inp = jnp.concatenate([x[term_name], previous_out], axis=1)
                else:
                    inp = previous_out
            else:
                inp = x[term_name]
            h = jnp.tanh(jnp.dot(inp, layer.W,
                                 precision=jax.lax.Precision.HIGHEST) + layer.b)
            p = jnp.tanh(jnp.dot(h, layer.Wa,
                                 precision=jax.lax.Precision.HIGHEST) + layer.ba)
            trans_out[term_name] = h
            predict_out[term_name] = p
            term_states[term_name] = 1
    return predict_out


# ----------------------------------------------------------------------------
# Demo: small deterministic GO-term DAG.
# ----------------------------------------------------------------------------
if __name__ == "__main__":
    BATCH = 4
    HIDDEN = 8

    # DAG:  leaf1, leaf2  ->  mid  ->  root
    children_term_map = {
        "leaf1": [],
        "leaf2": [],
        "mid": ["leaf1", "leaf2"],
        "root": ["mid"],
    }
    children_gene_map = {
        "leaf1": list(range(6)),        # 6 genes
        "leaf2": list(range(5)),        # 5 genes
        "mid": list(range(3)),          # 3 direct genes
        "root": [],                     # no direct genes
    }
    term_state = {t: 0 for t in children_term_map}

    in_dims = {
        "leaf1": 6,
        "leaf2": 5,
        "mid": 3 + 2 * HIDDEN,          # genes + concat(children trans)
        "root": 1 * HIDDEN,             # children trans only
    }

    root_key = jax.random.PRNGKey(0)
    param_keys = jax.random.split(root_key, len(in_dims) + 1)
    term_node_layers = {
        name: NodeLayer(param_keys[i], in_dims[name], HIDDEN)
        for i, name in enumerate(["leaf1", "leaf2", "mid", "root"])
    }

    xk = jax.random.split(param_keys[-1], 3)
    x = {
        "leaf1": jax.random.normal(xk[0], (BATCH, 6), jnp.float32),
        "leaf2": jax.random.normal(xk[1], (BATCH, 5), jnp.float32),
        "mid": jax.random.normal(xk[2], (BATCH, 3), jnp.float32),
        # "root" has no gene input and is never indexed in forward().
    }

    model = CombineNode(term_node_layers, term_state, children_term_map,
                        children_gene_map)
    predict_out = model.forward(x)
    jax.block_until_ready(predict_out)

    # Compare against the pure-JAX replica of the reference forward.
    ref_out = reference_forward(model, x)
    assert set(predict_out.keys()) == set(ref_out.keys()) == set(children_term_map)
    for name in ref_out:
        got = np.asarray(predict_out[name])
        want = np.asarray(ref_out[name])
        assert got.shape == (BATCH, 1), (name, got.shape)
        np.testing.assert_allclose(got, want, rtol=1e-4, atol=1e-4)

    print("KERNEL_OK")
</pallas_src>

<mosaic_0001>
module attributes {stable_mosaic.version = 11 : i64} {
  func.func @kernel(%arg0: i32, %arg1: memref<4x2xi32, #tpu.memory_space<smem>>, %arg2: memref<8x128xf32, #tpu.memory_space<vmem>>, %arg3: memref<1x384x128xf32, #tpu.memory_space<vmem>>, %arg4: memref<1x1x128xf32, #tpu.memory_space<vmem>>, %arg5: memref<1x1x128xf32, #tpu.memory_space<vmem>>, %arg6: memref<1x1x1xf32, #tpu.memory_space<vmem>>, %arg7: memref<40x128xf32, #tpu.memory_space<vmem>>, %arg8: memref<8x128xf32, #tpu.memory_space<vmem>>, %arg9: memref<8x384xf32, #tpu.memory_space<vmem>>) attributes {dimension_semantics = [#tpu.dimension_semantics<arbitrary>], iteration_bounds = array<i64: 4>, scalar_prefetch = 1 : i64, scratch_operands = 1 : i64, tpu.core_type = #tpu.core_type<tc>, window_params = [{transform_indices = @transform_0, window_bounds = array<i64: 8, 128>}, {transform_indices = @transform_1, window_bounds = array<i64: 1, 384, 128>}, {transform_indices = @transform_2, window_bounds = array<i64: 1, 1, 128>}, {transform_indices = @transform_3, window_bounds = array<i64: 1, 1, 128>}, {transform_indices = @transform_4, window_bounds = array<i64: 1, 1, 1>}, {pipeline_mode = #tpu.pipeline_mode<synchronous>, transform_indices = @transform_5, window_bounds = array<i64: 40, 128>}, {pipeline_mode = #tpu.pipeline_mode<synchronous>, transform_indices = @transform_6, window_bounds = array<i64: 8, 128>}]} {
    %c0_i32 = arith.constant 0 : i32
    %0 = arith.cmpi eq, %arg0, %c0_i32 : i32
    %1 = arith.extui %0 : i1 to i32
    %c0_i32_0 = arith.constant 0 : i32
    %2 = arith.cmpi ne, %1, %c0_i32_0 : i32
    scf.if %2 {
      %cst_31 = arith.constant 0.000000e+00 : f32
      %51 = vector.broadcast %cst_31 : f32 to vector<40x128xf32>
      %c0_32 = arith.constant 0 : index
      %c0_33 = arith.constant 0 : index
      %52 = vector.load %arg7[%c0_32, %c0_33] : memref<40x128xf32, #tpu.memory_space<vmem>>, vector<40x128xf32>
      tpu.vector_store %arg7[%c0_32, %c0_33], %51 {strides = array<i32>} : memref<40x128xf32, #tpu.memory_space<vmem>>, vector<40x128xf32>,
      %cst_34 = arith.constant 0.000000e+00 : f32
      %53 = vector.broadcast %cst_34 : f32 to vector<8x128xf32>
      %c0_35 = arith.constant 0 : index
      %c0_36 = arith.constant 0 : index
      %54 = vector.load %arg8[%c0_35, %c0_36] : memref<8x128xf32, #tpu.memory_space<vmem>>, vector<8x128xf32>
      tpu.vector_store %arg8[%c0_35, %c0_36], %53 {strides = array<i32>} : memref<8x128xf32, #tpu.memory_space<vmem>>, vector<8x128xf32>,
    } else {
    }
    %c0 = arith.constant 0 : index
    %c0_1 = arith.constant 0 : index
    %3 = vector.load %arg2[%c0, %c0_1] : memref<8x128xf32, #tpu.memory_space<vmem>>, vector<8x128xf32>
    %c0_2 = arith.constant 0 : index
    %c0_3 = arith.constant 0 : index
    %4 = vector.load %arg9[%c0_2, %c0_3] : memref<8x384xf32, #tpu.memory_space<vmem>>, vector<8x128xf32>
    tpu.vector_store %arg9[%c0_2, %c0_3], %3 {strides = array<i32>} : memref<8x384xf32, #tpu.memory_space<vmem>>, vector<8x128xf32>,
    %5 = arith.index_cast %arg0 : i32 to index
    %c0_4 = arith.constant 0 : index
    %6 = memref.load %arg1[%5, %c0_4] : memref<4x2xi32, #tpu.memory_space<smem>>
    %c8_i32 = arith.constant 8 : i32
    %7 = arith.muli %6, %c8_i32 : i32
    %8 = tpu.assume_multiple %7, 8 : i32
    %9 = arith.index_cast %8 : i32 to index
    %c0_5 = arith.constant 0 : index
    %10 = vector.load %arg7[%9, %c0_5] : memref<40x128xf32, #tpu.memory_space<vmem>>, vector<8x128xf32>
    %c0_6 = arith.constant 0 : index
    %c128 = arith.constant 128 : index
    %11 = vector.load %arg9[%c0_6, %c128] : memref<8x384xf32, #tpu.memory_space<vmem>>, vector<8x128xf32>
    tpu.vector_store %arg9[%c0_6, %c128], %10 {strides = array<i32>} : memref<8x384xf32, #tpu.memory_space<vmem>>, vector<8x128xf32>,
    %12 = arith.index_cast %arg0 : i32 to index
    %c1 = arith.constant 1 : index
    %13 = memref.load %arg1[%12, %c1] : memref<4x2xi32, #tpu.memory_space<smem>>
    %c8_i32_7 = arith.constant 8 : i32
    %14 = arith.muli %13, %c8_i32_7 : i32
    %15 = tpu.assume_multiple %14, 8 : i32
    %16 = arith.index_cast %15 : i32 to index
    %c0_8 = arith.constant 0 : index
    %17 = vector.load %arg7[%16, %c0_8] : memref<40x128xf32, #tpu.memory_space<vmem>>, vector<8x128xf32>
    %c0_9 = arith.constant 0 : index
    %c256 = arith.constant 256 : index
    %18 = vector.load %arg9[%c0_9, %c256] : memref<8x384xf32, #tpu.memory_space<vmem>>, vector<8x128xf32>
    tpu.vector_store %arg9[%c0_9, %c256], %17 {strides = array<i32>} : memref<8x384xf32, #tpu.memory_space<vmem>>, vector<8x128xf32>,
    %c0_10 = arith.constant 0 : index
    %c0_11 = arith.constant 0 : index
    %19 = vector.load %arg9[%c0_10, %c0_11] : memref<8x384xf32, #tpu.memory_space<vmem>>, vector<8x384xf32>
    %c0_12 = arith.constant 0 : index
    %c0_13 = arith.constant 0 : index
    %c0_14 = arith.constant 0 : index
    %20 = vector.load %arg3[%c0_12, %c0_13, %c0_14] : memref<1x384x128xf32, #tpu.memory_space<vmem>>, vector<1x384x128xf32>
    %21 = vector.shape_cast %20 : vector<1x384x128xf32> to vector<384x128xf32>
    %cst = arith.constant dense<0.000000e+00> : vector<8x128xf32>
    %22 = tpu.matmul %19, %21, %cst {dimension_numbers = #tpu.dot_dimension_numbers<[1], [0], [0], [1], [0, 0, 1, 1], [], []>} : vector<8x384xf32>, vector<384x128xf32>, vector<8x128xf32> -> vector<8x128xf32>
    %c0_15 = arith.constant 0 : index
    %c0_16 = arith.constant 0 : index
    %c0_17 = arith.constant 0 : index
    %23 = vector.load %arg4[%c0_15, %c0_16, %c0_17] : memref<1x1x128xf32, #tpu.memory_space<vmem>>, vector<1x1x128xf32>
    %24 = vector.shape_cast %23 : vector<1x1x128xf32> to vector<1x128xf32>
    %25 = vector.broadcast %24 : vector<1x128xf32> to vector<8x128xf32>
    %26 = arith.addf %22, %25 : vector<8x128xf32>
    %27 = math.tanh %26 : vector<8x128xf32>
    %c8_i32_18 = arith.constant 8 : i32
    %28 = arith.muli %arg0, %c8_i32_18 : i32
    %29 = tpu.assume_multiple %28, 8 : i32
    %30 = arith.index_cast %29 : i32 to index
    %c0_19 = arith.constant 0 : index
    %31 = vector.load %arg7[%30, %c0_19] : memref<40x128xf32, #tpu.memory_space<vmem>>, vector<8x128xf32>
    tpu.vector_store %arg7[%30, %c0_19], %27 {strides = array<i32>} : memref<40x128xf32, #tpu.memory_space<vmem>>, vector<8x128xf32>,
    %c0_20 = arith.constant 0 : index
    %c0_21 = arith.constant 0 : index
    %c0_22 = arith.constant 0 : index
    %32 = vector.load %arg5[%c0_20, %c0_21, %c0_22] : memref<1x1x128xf32, #tpu.memory_space<vmem>>, vector<1x1x128xf32>
    %33 = vector.shape_cast %32 : vector<1x1x128xf32> to vector<1x128xf32>
    %34 = vector.broadcast %33 : vector<1x128xf32> to vector<8x128xf32>
    %35 = arith.mulf %27, %34 : vector<8x128xf32>
    %cst_23 = arith.constant dense<0.000000e+00> : vector<8xf32>
    %36 = vector.multi_reduction <add>, %35, %cst_23 [1] : vector<8x128xf32> to vector<8xf32>
    %37 = vector.shape_cast %36 : vector<8xf32> to vector<8x1xf32>
    %c0_24 = arith.constant 0 : index
    %c0_25 = arith.constant 0 : index
    %c0_26 = arith.constant 0 : index
    %38 = vector.load %arg6[%c0_24, %c0_25, %c0_26] : memref<1x1x1xf32, #tpu.memory_space<vmem>>, vector<1x1x1xf32>
    %39 = vector.shape_cast %38 : vector<1x1x1xf32> to vector<1x1xf32>
    %40 = vector.broadcast %39 : vector<1x1xf32> to vector<8x1xf32>
    %41 = arith.addf %37, %40 : vector<8x1xf32>
    %42 = math.tanh %41 : vector<8x1xf32>
    %43 = tpu.iota {dimensions = array<i32: 1>} : vector<8x128xi32>
    %44 = vector.broadcast %arg0 : i32 to vector<8x128xi32>
    %45 = arith.cmpi eq, %43, %44 : vector<8x128xi32>
    %c0_27 = arith.constant 0 : index
    %c0_28 = arith.constant 0 : index
    %46 = vector.load %arg8[%c0_27, %c0_28] : memref<8x128xf32, #tpu.memory_space<vmem>>, vector<8x128xf32>
    %47 = vector.shape_cast %42 : vector<8x1xf32> to vector<8x1xf32>
    %48 = vector.broadcast %47 : vector<8x1xf32> to vector<8x128xf32>
    %49 = arith.select %45, %48, %46 : vector<8x128xi1>, vector<8x128xf32>
    %c0_29 = arith.constant 0 : index
    %c0_30 = arith.constant 0 : index
    %50 = vector.load %arg8[%c0_29, %c0_30] : memref<8x128xf32, #tpu.memory_space<vmem>>, vector<8x128xf32>
    tpu.vector_store %arg8[%c0_29, %c0_30], %49 {strides = array<i32>} : memref<8x128xf32, #tpu.memory_space<vmem>>, vector<8x128xf32>,
    return
  }
  func.func @transform_0(%arg0: i32, %arg1: memref<4x2xi32, #tpu.memory_space<smem>>) -> (i32, i32) {
    %c0_i32 = arith.constant 0 : i32
    %c0_i32_0 = arith.constant 0 : i32
    return %arg0, %c0_i32 : i32, i32
  }
  func.func @transform_1(%arg0: i32, %arg1: memref<4x2xi32, #tpu.memory_space<smem>>) -> (i32, i32, i32) {
    %c0_i32 = arith.constant 0 : i32
    %c0_i32_0 = arith.constant 0 : i32
    %c0_i32_1 = arith.constant 0 : i32
    return %arg0, %c0_i32, %c0_i32_0 : i32, i32, i32
  }
  func.func @transform_2(%arg0: i32, %arg1: memref<4x2xi32, #tpu.memory_space<smem>>) -> (i32, i32, i32) {
    %c0_i32 = arith.constant 0 : i32
    %c0_i32_0 = arith.constant 0 : i32
    %c0_i32_1 = arith.constant 0 : i32
    return %arg0, %c0_i32, %c0_i32_0 : i32, i32, i32
  }
  func.func @transform_3(%arg0: i32, %arg1: memref<4x2xi32, #tpu.memory_space<smem>>) -> (i32, i32, i32) {
    %c0_i32 = arith.constant 0 : i32
    %c0_i32_0 = arith.constant 0 : i32
    %c0_i32_1 = arith.constant 0 : i32
    return %arg0, %c0_i32, %c0_i32_0 : i32, i32, i32
  }
  func.func @transform_4(%arg0: i32, %arg1: memref<4x2xi32, #tpu.memory_space<smem>>) -> (i32, i32, i32) {
    %c0_i32 = arith.constant 0 : i32
    %c0_i32_0 = arith.constant 0 : i32
    %c0_i32_1 = arith.constant 0 : i32
    return %arg0, %c0_i32, %c0_i32_0 : i32, i32, i32
  }
  func.func @transform_5(%arg0: i32, %arg1: memref<4x2xi32, #tpu.memory_space<smem>>) -> (i32, i32) {
    %c0_i32 = arith.constant 0 : i32
    %c0_i32_0 = arith.constant 0 : i32
    %c0_i32_1 = arith.constant 0 : i32
    return %c0_i32, %c0_i32_0 : i32, i32
  }
  func.func @transform_6(%arg0: i32, %arg1: memref<4x2xi32, #tpu.memory_space<smem>>) -> (i32, i32) {
    %c0_i32 = arith.constant 0 : i32
    %c0_i32_0 = arith.constant 0 : i32
    %c0_i32_1 = arith.constant 0 : i32
    return %c0_i32, %c0_i32_0 : i32, i32
  }
}

</mosaic_0001>

<bundles_post_ra>
// kernel: tpu_custom_call.1
= control target key start
LH: loop header
LB: loop body
LE: loop exit
PB: predicated region body
PF: predicated region fallthrough
CT: control target
= control target key end

     0   :  { %s1511_s0 = inlined_call_operand.vmem [shape: s32[4,2], index: 0, kind: input, shape index: {}]   ;;  %s1512_s1 = inlined_call_operand.hbm [shape: f32[32,128], index: 1, kind: input, shape index: {}]   ;;  %s1513_s2 = inlined_call_operand.hbm [shape: f32[4,384,128], index: 2, kind: input, shape index: {}]   ;;  %s1514_s3 = inlined_call_operand.vmem [shape: f32[4,1,128], index: 3, kind: input, shape index: {}]   ;;  %s1515_s4 = inlined_call_operand.vmem [shape: f32[4,1,128], index: 4, kind: input, shape index: {}]   ;;  %s1516_s5 = inlined_call_operand.vmem [shape: f32[4,1,1], index: 5, kind: input, shape index: {}]   ;;  %s1517_s6 = inlined_call_operand.hbm [shape: f32[40,128], index: 6, kind: output, shape index: {0}]   ;;  %s1518_s7 = inlined_call_operand.hbm [shape: f32[8,128], index: 7, kind: output, shape index: {1}]  }
   0x1   :  { %s13_s26 = sshll.u32 %s1511_s0, 4  ;;  %s14_s26 = int_to_ptr.vmem [resolvable:$true] %s13_s26 }
   0x2   :  { %s978_s27 = scalar_lea.vmem %s14_s26, 64  ;;  %p983_p1 = scmp.lt.s32.totalorder %s14_s26, %s14_s26 }
   0x3   :  { %p979_p0 = scmp.ne.s32.totalorder %s14_s26, %s978_s27  ;;  %p984_p2 = scmp.lt.s32.totalorder %s978_s27, %s978_s27 }
   0x5   :  { %p985_p3 = por %p984_p2, %p983_p1 }
   0x7   :  { %p986_p4 = pnand %p985_p3, %p979_p0 }
   0x9   :  { %989 = shalt.err (!%p986_p4)  }
   0xa   :  { %s1152_s28 = smov [#allocation4]  }
   0xb   :  { %16 = dma.vmem_to_smem %s14_s26, 64, %s1152_s28, [#allocation3] }
   0xc   :  { %1118 = dma.done.wait [#allocation3], 64 }
   0xd   :  { %1119 = vsyncadd [#allocation3], 4294967232 }
   0xe   :  { %18 = sfence }
   0xf   :  { %19 = vsyncpa [#allocation6], 0 }
  0x10   :  { %21 = vsyncpa [#allocation6 + $0x1], 0 }
  0x11   :  { %22 = vsyncpa [#allocation9], 0 }
  0x12   :  { %24 = vsyncpa [#allocation9 + $0x1], 0 }
  0x13   :  { %25 = vsyncpa [#allocation7], 0 }
  0x14   :  { %26 = vsyncpa [#allocation12], 0  ;;  %s1209_s0 = smov 0   ;;  %s1211_s29 = smov 0  }
  0x15   :  { %s1213_s30 = smov 0   ;;  %s1215_s8 = smov 0  }
  0x16 LB: > { %s1228_s9 = sadd.s32 4294967295, %s1150_s8   ;;  %s1231_s10 = sadd.s32 1, %s1150_s8   ;;  %s1150_s8 = sphi %s1215_s8, %s1529_s8   ;;  %s1146_s30 = sphi %s1213_s30, %s1528_s30   ;;  %s1142_s29 = sphi %s1211_s29, %s1527_s29   ;;  %s1138_s0 = sphi %s1209_s0, %s1526_s0  }
  0x17   : > { %s36_s11 = ssub.s32 %s1150_s8, %s1231_s10  ;;  %s39_s12 = sadd.s32 1, %s1146_s30 }
  0x18   : > { %p37_p5 = scmp.eq.s32.totalorder %s36_s11, 0  ;;  %p46_p6 = scmp.ne.s32.totalorder %s1146_s30, %s1142_s29 }
  0x19   : > { %p47_p7 = scmp.eq.s32.totalorder %s1150_s8, 0  ;;  %p52_p8 = scmp.ne.s32.totalorder %s1142_s29, %s1138_s0 }
  0x1a   : > { %s1241_s13 = scalar_select %p37_p5, %s1146_s30, %s39_s12  }
  0x1b   : > { %p48_p9 = por %p47_p7, %p46_p6  ;;  %p53_p10 = scmp.eq.s32.totalorder %s1228_s9, 0 }
  0x1c   : > { %p924_p11 = scmp.lt.s32.totalorder %s1150_s8, 4  ;;  %s1250_s15 = sand.u32 1, %s1146_s30  }
  0x1d   : > { %p1245_p12 = por %p53_p10, %p52_p8  ;;  %s740_s16 = sshll.u32 %s1250_s15, 3 }
  0x1e   : > { %s741_s17 = sshll.u32 %s1150_s8, 7  ;;  %s226_s21 = scalar_lea.vmem [#allocation5], %s740_s16 }
  0x1f   : > { %s1520_s14 = scalar_select %p1245_p12, 1, 0 }
  0x20   : > { %s1257_s20 = scalar_lea.hbm %s1512_s1, %s741_s17  ;;  %s233_s22 = sshll.u32 %s226_s21, 4  ;;  %s1259_s22 = int_to_ptr.vmem [resolvable:$true] %s233_s22 }
  0x21   : > { %p1261_p13 = pnand %p924_p11, %p48_p9  ;;  %s223_s24 = scalar_lea.sflag [#allocation6], %s1250_s15 }
  0x22   : > { %s990_s25 = scalar_lea.hbm %s1257_s20, 128  ;;  %s995_s28 = scalar_lea.hbm %s1512_s1, 512 }
  0x23   : > { %p991_p2 = scmp.ne.s32.totalorder %s1257_s20, %s990_s25  ;;  %p992_p3 = pneg %p1261_p13 }
  0x24   : > { %p996_p6 = scmp.lt.u32.totalorder %s1257_s20, %s1512_s1  ;;  %p997_p7 = scmp.lt.u32.totalorder %s995_s28, %s990_s25 }
  0x25   : > { %p993_p4 = pnand %p992_p3, %p991_p2  ;;  %p999_p9 = scmp.lt.u32.totalorder %s990_s25, %s1257_s20 }
  0x26   : > { %p998_p8 = por %p997_p7, %p996_p6 }
  0x27   : > { %p994_p5 = pneg %p993_p4 }
  0x28   : > { %p1000_p10 = por %p999_p9, %p998_p8 }
  0x2a   : > { %p1001_p11 = pnand %p1000_p10, %p994_p5 }
  0x2c   : > { %1004 = shalt.err (!%p1001_p11)
}
  0x2d   : > { %s1005_s12 = scalar_lea.vmem %s1259_s22, 128  ;;  %s1153_s16 = smov [#allocation5]  }
  0x2e   : > { %p1006_p2 = scmp.ne.s32.totalorder %s1259_s22, %s1005_s12  ;;  %s1010_s17 = sshll.u32 %s1153_s16, 4  ;;  %s1011_s17 = int_to_ptr.vmem [resolvable:$false] %s1010_s17 }
  0x2f   : > { %s1012_s18 = scalar_lea.vmem %s1011_s17, 256  ;;  %p1013_p1 = scmp.lt.s32.totalorder %s1259_s22, %s1011_s17 }
  0x30   : > { %p1008_p4 = pnand %p1006_p2, %p992_p3  ;;  %p1014_p6 = scmp.lt.s32.totalorder %s1012_s18, %s1005_s12 }
  0x32   : > { %p1009_p0 = pneg %p1008_p4  ;;  %p1015_p7 = por %p1014_p6, %p1013_p1 }
  0x34   : > { %p1016_p8 = pnand %p1015_p7, %p1009_p0 }
  0x36   : > { %1019 = shalt.err (!%p1016_p8)
}
  0x37   : > { %920 = dma.hbm_to_vmem [thread:$0]  (!%p1261_p13), %s1257_s20, 128, %s1259_s22, %s223_s24  }
  0x38   : > { %p1522_p5 = scmp.lt.s32.totalorder %s1150_s8, 5  ;;  %p1523_p9 = scmp.ge.s32.totalorder %s1150_s8, 1 }
  0x39   : > { %s902_s21 = smul.u32 384, %s1250_s15  ;;  %s241_s20 = scalar_lea.sflag [#allocation9], %s1250_s15 }
  0x3a   : > { %p1297_p10 = pnand %p1523_p9, %p1522_p5  ;;  %s903_s25 = smul.u32 6144, %s1150_s8 }
  0x3b   : > { %s244_s0 = scalar_lea.vmem [#allocation8], %s902_s21  ;;  %s1025_s12 = scalar_lea.hbm %s1513_s2, 24576 }
  0x3c   : > { %s1306_s28 = scalar_lea.hbm %s1513_s2, %s903_s25  ;;  %s251_s11 = sshll.u32 %s244_s0, 4  ;;  %s1308_s11 = int_to_ptr.vmem [resolvable:$true] %s251_s11 }
  0x3d   : > { %s1020_s22 = scalar_lea.hbm %s1306_s28, 6144  ;;  %p1026_p2 = scmp.lt.u32.totalorder %s1306_s28, %s1513_s2 }
  0x3e   : > { %p1021_p0 = scmp.ne.s32.totalorder %s1306_s28, %s1020_s22  ;;  %p1027_p4 = scmp.lt.u32.totalorder %s1025_s12, %s1020_s22 }
  0x3f   : > { %p1029_p7 = scmp.lt.u32.totalorder %s1020_s22, %s1306_s28 }
  0x40   : > { %p1023_p1 = pnand %p1021_p0, %p992_p3  ;;  %p1028_p6 = por %p1027_p4, %p1026_p2 }
  0x42   : > { %p1024_p11 = pneg %p1023_p1  ;;  %p1030_p8 = por %p1029_p7, %p1028_p6 }
  0x44   : > { %p1031_p5 = pnand %p1030_p8, %p1024_p11 }
  0x46   : > { %1034 = shalt.err (!%p1031_p5)
}
  0x47   : > { %s1035_s18 = scalar_lea.vmem %s1308_s11, 6144  ;;  %s1154_s21 = smov [#allocation8]  }
  0x48   : > { %p1036_p9 = scmp.ne.s32.totalorder %s1308_s11, %s1035_s18  ;;  %s1040_s25 = sshll.u32 %s1154_s21, 4  ;;  %s1041_s25 = int_to_ptr.vmem [resolvable:$false] %s1040_s25 }
  0x49   : > { %s1042_s26 = scalar_lea.vmem %s1041_s25, 12288  ;;  %p1043_p12 = scmp.lt.s32.totalorder %s1308_s11, %s1041_s25 }
  0x4a   : > { %p1038_p0 = pnand %p1036_p9, %p992_p3  ;;  %p1044_p2 = scmp.lt.s32.totalorder %s1042_s26, %s1035_s18 }
  0x4c   : > { %p1039_p1 = pneg %p1038_p0  ;;  %p1045_p4 = por %p1044_p2, %p1043_p12 }
  0x4e   : > { %p1046_p6 = pnand %p1045_p4, %p1039_p1 }
  0x50   : > { %1049 = shalt.err (!%p1046_p6)
}
  0x51   : > { %s1155_s27 = smov 128   ;;  %s1156_s0 = smov 8  }
  0x52   : > { %923 = dma.hbm_to_vmem [thread:$0]  (!%p1261_p13), %s1306_s28, 6144, %s1308_s11, %s241_s20, %s1155_s27, %s1155_s27, %s1156_s0  }
  0x53   : > { %281 = sbr.rel (%p1297_p10) target bundleno = 673 (0x2a1), region = 40  ;;  %s283_s22 = sand.u32 (!%p1297_p10), 1, %s1142_s29  }
  0x54   : > { %s744_s8 = sshll.u32 (!%p1297_p10), %s283_s22, 3  ;;  %s284_s24 = scalar_lea.sflag (!%p1297_p10), [#allocation6], %s283_s22 }
  0x55   : > { %s1339_s12 = scalar_lea.vmem (!%p1297_p10), [#allocation5], %s744_s8  ;;  %p1525_p12 = scmp.ne.s32.totalorder (!%p1297_p10), %s1520_s14, 0 }
  0x5a   : > { %1121 = dma.done.wait (%p1525_p12), %s284_s24, 128  }
  0x5b   : > { %1123 = vsyncadd (%p1525_p12), %s284_s24, 4294967168  ;;  %s904_s16 = smul.u32 384, %s283_s22  ;;  %s293_s23 = scalar_lea.sflag [#allocation9], %s283_s22 }
  0x5d   : > { %s1345_s15 = scalar_lea.vmem [#allocation8], %s904_s16 }
  0x5e   : > { %1125 = dma.done.wait (%p1525_p12), %s293_s23, 6144  }
  0x5f   : > { %1127 = vsyncadd (%p1525_p12), %s293_s23, 4294961152  ;;  %p334_p13 = scmp.lt.s32.totalorder %s1228_s9, 3  ;;  %p745_p3 = scmp.ne.s32.totalorder %s1228_s9, 0 }
  0x60   : > { %v1157_v0 = vmov (!%p745_p3), 0.0  }
  0x61   : > { %s1353_s19 = scalar_select %p334_p13, %s1228_s9, 3 }
  0x62   : > { %346 = sbr.rel (%p745_p3) target bundleno = 105 (0x69), region = 52  ;;  %347 = vst [vmem:[#allocation10] sm:$0xff] (!%p745_p3), %v1157_v0  ;;  %348 = vst [vmem:[#allocation10 + $0x8] sm:$0xff] (!%p745_p3), %v1157_v0 }
  0x63   : > { %s336_s20 = scalar_lea.vmem %s1514_s3, %s1353_s19  ;;  %s339_s21 = scalar_lea.vmem %s1515_s4, %s1353_s19  ;;  %349 = vst [vmem:[#allocation10 + $0x10] sm:$0xff] (!%p745_p3), %v1157_v0  ;;  %350 = vst [vmem:[#allocation10 + $0x18] sm:$0xff] (!%p745_p3), %v1157_v0 }
  0x64   : > { %s342_s14 = scalar_lea.vmem %s1516_s5, %s1353_s19  ;;  %351 = vst [vmem:[#allocation10 + $0x20] sm:$0xff] (!%p745_p3), %v1157_v0  ;;  %352 = vst [vmem:[#allocation11] sm:$0xff] (!%p745_p3), %v1157_v0 }
  0x69 PF: > { %v386_v1 = vld [vmem:[%s1345_s15 + $0x80] sm:$0xff]  ;;  %v387_v2 = vld [vmem:[%s1345_s15 + $0x88] sm:$0xff]  ;;  %s746_s27 = sshll.u32 %s1228_s9, 7  ;;  %v388_v6 = vld [vmem:[%s1345_s15 + $0x90] sm:$0xff]  ;;  %v1158_v8 = vmov 0.0|0.0   ;;  %vm1159_vm0 = vmmov 0  }
  0x6a   : > { %v370_v3 = vld [vmem:[%s1345_s15] sm:$0xff]  ;;  %v846_v4 = vpack.c.bf16 %v387_v2, %v386_v1  ;;  %v371_v5 = vld [vmem:[%s1345_s15 + $0x8] sm:$0xff]  ;;  %v389_v7 = vld [vmem:[%s1345_s15 + $0x98] sm:$0xff]  ;;  %878 = vmatprep.subr.bf16.mxu1 %v1158_v8  ;;  %s1378_s0 = sld [smem:[#allocation4 + %s746_s27]]  ;;  %v1160_v14 = vmov 0.0   ;;  %s361_s24 = sadd.s32 1, %s746_s27 }
  0x6b   : > { %v848_v9 = vpack.c.bf16 %v371_v5, %v370_v3  ;;  %v850_v10 = vpack.c.bf16 %v389_v7, %v388_v6  ;;  %v372_v11 = vld [vmem:[%s1345_s15 + $0x10] sm:$0xff]  ;;  %v373_v12 = vld [vmem:[%s1345_s15 + $0x18] sm:$0xff]  ;;  %v402_v13 = vld [vmem:[%s1345_s15 + $0x100] sm:$0xff]  ;;  %843 = vmatprep.mubr.msk.f32.mxu1 %vm1159_vm0, %v1160_v14  ;;  %s1419_s16 = sld [smem:[#allocation4 + %s361_s24]]  ;;  %p925_p10 = scmp.eq.s32.totalorder %s1228_s9, 3 }
  0x6c   : > { %847 = vmatprep.subr.bf16.mxu0 %v846_v4  ;;  %v403_v15 = vld [vmem:[%s1345_s15 + $0x108] sm:$0xff]  ;;  %v390_v16 = vld [vmem:[%s1345_s15 + $0xa0] sm:$0xff]  ;;  %v852_v18 = vpack.c.bf16 %v373_v12, %v372_v11  ;;  %v404_v20 = vld [vmem:[%s1345_s15 + $0x110] sm:$0xff] }
  0x6d   : > { %v391_v17 = vld [vmem:[%s1345_s15 + $0xa8] sm:$0xff]  ;;  %849 = vmatpush3.bf16.msra.mxu0 %v848_v9  ;;  %v879_v19 = vpack.c.bf16 %v403_v15, %v402_v13  ;;  %v374_v22 = vld [vmem:[%s1345_s15 + $0x20] sm:$0xff]  ;;  %v405_v24 = vld [vmem:[%s1345_s15 + $0x118] sm:$0xff] }
  0x6e   : > { %851 = vmatprep.subr.bf16.mxu0 %v850_v10  ;;  %v854_v21 = vpack.c.bf16 %v391_v17, %v390_v16  ;;  %v375_v23 = vld [vmem:[%s1345_s15 + $0x28] sm:$0xff]  ;;  %v882_v25 = vpack.c.bf16 %v405_v24, %v404_v20  ;;  %v392_v26 = vld [vmem:[%s1345_s15 + $0xb0] sm:$0xff]  ;;  %v393_v27 = vld [vmem:[%s1345_s15 + $0xb8] sm:$0xff] }
  0x6f   : > { %880 = vmatpush3.bf16.msra.mxu1 %v879_v19  ;;  %v406_v28 = vld [vmem:[%s1345_s15 + $0x120] sm:$0xff]  ;;  %v407_v29 = vld [vmem:[%s1345_s15 + $0x128] sm:$0xff]  ;;  %v856_v30 = vpack.c.bf16 %v375_v23, %v374_v22  ;;  %v858_v31 = vpack.c.bf16 %v393_v27, %v392_v26  ;;  %v376_v32 = vld [vmem:[%s1345_s15 + $0x30] sm:$0xff] }
  0x70   : > { %881 = vmatprep.subr.bf16.mxu1 %v1158_v8  ;;  %v377_v33 = vld [vmem:[%s1345_s15 + $0x38] sm:$0xff]  ;;  %s747_s22 = sshll.u32 %s1378_s0, 3  ;;  %v885_v34 = vpack.c.bf16 %v407_v29, %v406_v28  ;;  %v394_v35 = vld [vmem:[%s1345_s15 + $0xc0] sm:$0xff]  ;;  %v395_v36 = vld [vmem:[%s1345_s15 + $0xc8] sm:$0xff] }
  0x71   : > { %853 = vmatpush3.bf16.msra.mxu0 %v852_v18  ;;  %v408_v37 = vld [vmem:[%s1345_s15 + $0x130] sm:$0xff]  ;;  %v409_v38 = vld [vmem:[%s1345_s15 + $0x138] sm:$0xff]  ;;  %v860_v39 = vpack.c.bf16 %v377_v33, %v376_v32  ;;  %v862_v40 = vpack.c.bf16 %v395_v36, %v394_v35  ;;  %v378_v41 = vld [vmem:[%s1345_s15 + $0x40] sm:$0xff]  ;;  %s358_s8 = scalar_lea.vmem [#allocation10], %s747_s22  ;;  %s748_s23 = sshll.u32 %s1419_s16, 3 }
  0x72   : > { %855 = vmatprep.subr.bf16.mxu0 %v854_v21  ;;  %v379_v42 = vld [vmem:[%s1345_s15 + $0x48] sm:$0xff]  ;;  %v888_v43 = vpack.c.bf16 %v409_v38, %v408_v37  ;;  %v396_v44 = vld [vmem:[%s1345_s15 + $0xd0] sm:$0xff]  ;;  %v397_v45 = vld [vmem:[%s1345_s15 + $0xd8] sm:$0xff]  ;;  %s364_s28 = scalar_lea.vmem [#allocation10], %s748_s23 }
  0x73   : > { %883 = vmatpush3.bf16.msra.mxu1 %v882_v25  ;;  %v410_v46 = vld [vmem:[%s1345_s15 + $0x140] sm:$0xff]  ;;  %v411_v47 = vld [vmem:[%s1345_s15 + $0x148] sm:$0xff]  ;;  %v864_v49 = vpack.c.bf16 %v379_v42, %v378_v41  ;;  %v866_v50 = vpack.c.bf16 %v397_v45, %v396_v44  ;;  %v380_v51 = vld [vmem:[%s1345_s15 + $0x50] sm:$0xff]  ;;  %v1161_v25 = vmov 0  }
  0x74   : > { %884 = vmatprep.subr.bf16.mxu1 %v1158_v8  ;;  %v359_v48 = vld [vmem:[%s358_s8] sm:$0xff]  ;;  %v381_v52 = vld [vmem:[%s1345_s15 + $0x58] sm:$0xff]  ;;  %v891_v53 = vpack.c.bf16 %v411_v47, %v410_v46  ;;  %v399_v55 = vld [vmem:[%s1345_s15 + $0xe8] sm:$0xff]  ;;  %973 = vset.pattern.permute.xlu0 %v1161_v25 }
  0x75   : > { %857 = vmatpush3.bf16.msra.mxu0 %v856_v30  ;;  %489 = vmatprep.mubr.f32.mxu0 %v359_v48  ;;  %v398_v54 = vld [vmem:[%s1345_s15 + $0xe0] sm:$0xff]  ;;  %v412_v56 = vld [vmem:[%s1345_s15 + $0x150] sm:$0xff]  ;;  %v413_v57 = vld [vmem:[%s1345_s15 + $0x158] sm:$0xff]  ;;  %v868_v58 = vpack.c.bf16 %v381_v52, %v380_v51 }
  0x76   : > { %859 = vmatprep.subr.bf16.mxu0 %v858_v31  ;;  %v870_v59 = vpack.c.bf16 %v399_v55, %v398_v54  ;;  %v382_v60 = vld [vmem:[%s1345_s15 + $0x60] sm:$0xff]  ;;  %v383_v61 = vld [vmem:[%s1345_s15 + $0x68] sm:$0xff]  ;;  %v894_v62 = vpack.c.bf16 %v413_v57, %v412_v56  ;;  %v400_v63 = vld [vmem:[%s1345_s15 + $0xf0] sm:$0xff] }
  0x77   : > { %886 = vmatpush3.bf16.msra.mxu1 %v885_v34  ;;  %v401_v0 = vld [vmem:[%s1345_s15 + $0xf8] sm:$0xff]  ;;  %v414_v1 = vld [vmem:[%s1345_s15 + $0x160] sm:$0xff]  ;;  %v415_v2 = vld [vmem:[%s1345_s15 + $0x168] sm:$0xff]  ;;  %v872_v3 = vpack.c.bf16 %v383_v61, %v382_v60 }
  0x78   : > { %887 = vmatprep.subr.bf16.mxu1 %v1158_v8  ;;  %v874_v4 = vpack.c.bf16 %v401_v0, %v400_v63  ;;  %v384_v5 = vld [vmem:[%s1345_s15 + $0x70] sm:$0xff]  ;;  %v385_v6 = vld [vmem:[%s1345_s15 + $0x78] sm:$0xff]  ;;  %v897_v7 = vpack.c.bf16 %v415_v2, %v414_v1  ;;  %v365_v14 = vld [vmem:[%s364_s28] sm:$0xff] }
  0x79   : > { %861 = vmatpush3.bf16.msra.mxu0 %v860_v39  ;;  %v416_v9 = vld [vmem:[%s1345_s15 + $0x170] sm:$0xff]  ;;  %v417_v10 = vld [vmem:[%s1345_s15 + $0x178] sm:$0xff]  ;;  %v876_v11 = vpack.c.bf16 %v385_v6, %v384_v5  ;;  %v749_v17 = vld [vmem:[%s336_s20] ss:$0 sm:$0xff] }
  0x7a   : > { %863 = vmatprep.subr.bf16.mxu0 %v862_v40  ;;  %v900_v12 = vpack.c.bf16 %v417_v10, %v416_v9  ;;  %v353_v13 = vld [vmem:[%s1339_s12] sm:$0xff]  ;;  %s750_s12 = sshll.u32 %s1228_s9, 3  ;;  %v751_v22 = vld [vmem:[%s339_s21] ss:$0 sm:$0xff]  ;;  %s1162_s21 = smov [#allocation10]  }
  0x7b   : > { %889 = vmatpush3.bf16.msra.mxu1 %v888_v43  ;;  %s567_s25 = scalar_lea.vmem [#allocation10], %s750_s12  ;;  %v752_v26 = vld [vmem:[%s342_s14] ss:$0 sm:$0xff]  ;;  %s606_s27 = sshll.u32 %s1162_s21, 4  ;;  %s607_s27 = int_to_ptr.vmem [resolvable:$true] %s606_s27 }
  0x7c   : > { %890 = vmatprep.subr.bf16.mxu1 %v1158_v8  ;;  %s1050_s0 = scalar_lea.vmem %s607_s27, 640  ;;  %p1057_p5 = scmp.lt.s32.totalorder %s607_s27, %s607_s27 }
  0x7d   : > { %865 = vmatpush3.bf16.msra.mxu0 %v864_v49  ;;  %p1051_p11 = scmp.ne.s32.totalorder %s607_s27, %s1050_s0  ;;  %p1058_p9 = scmp.lt.s32.totalorder %s1050_s0, %s1050_s0 }
  0x7e   : > { %867 = vmatprep.subr.bf16.mxu0 %v866_v50 }
  0x7f   : > { %892 = vmatpush3.bf16.msra.mxu1 %v891_v53  ;;  %p1052_p7 = pnand %p1051_p11, %p925_p10  ;;  %p1059_p0 = por %p1058_p9, %p1057_p5 }
  0x80   : > { %893 = vmatprep.subr.bf16.mxu1 %v1158_v8 }
  0x81   : > { %869 = vmatpush3.bf16.msra.mxu0 %v868_v58  ;;  %p1053_p8 = pneg %p1052_p7 }
  0x82   : > { %871 = vmatprep.subr.bf16.mxu0 %v870_v59 }
  0x83   : > { %895 = vmatpush3.bf16.msra.mxu1 %v894_v62  ;;  %p1060_p1 = pnand %p1059_p0, %p1053_p8 }
  0x84   : > { %896 = vmatprep.subr.bf16.mxu1 %v1158_v8 }
  0x85   : > { %873 = vmatpush3.bf16.msra.mxu0 %v872_v3 }
  0x86   : > { %875 = vmatprep.subr.bf16.mxu0 %v874_v4 }
  0x87   : > { %898 = vmatpush3.bf16.msra.mxu1 %v897_v7 }
  0x88   : > { %899 = vmatprep.subr.bf16.mxu1 %v1158_v8 }
  0x89   : > { %877 = vmatpush3.bf16.msra.mxu0 %v876_v11 }
  0x8b   : > { %901 = vmatpush3.bf16.msra.mxu1 %v900_v12 }
  0x8c   : > { %490 = vmatmul.mubr.f32.vlgmr.msra.gmra.mrb[0].mxu0 %v353_v13 }
  0x8e   : > { %844 = vmatmul.mubr.f32.vlgmr.msra.gmra.mrb[0].mxu1 %v365_v14 }
 0x15f   : > { %v791_v15 = vpop.f32.mrb[0].mxu0 }
 0x160   : > { %v792_v16 = vpop.f32.mrb[1].mxu0 }
 0x161   : > { %v793_v18 = vadd.f32 %v792_v16, %v791_v15  ;;  %v561_v19 = vpop.f32.mrb[0].mxu1 }
 0x162   : > { %v845_v8 = vpop.f32.mrb[1].mxu1 }
 0x163   : > { %v492_v20 = vadd.f32 %v793_v18, %v749_v17 }
 0x165   : > { %v562_v21 = vadd.f32 %v561_v19, %v492_v20 }
 0x167   : > { %974 = vtanh.f32 %v562_v21 }
 0x171   : > { %v975_v23 = vpop.eup %974 }
 0x172   : > { %v576_v24 = vmul.f32 %v975_v23, %v751_v22  ;;  %568 = vst [vmem:[%s567_s25] sm:$0xff] %v975_v23 }
 0x174   : > { %577 = vadd.xlane.f32.xlu0 %v576_v24 }
 0x201   : > { %v578_v27 = vpop.xlane.xlu0 %577 }
 0x202   : > { %v586_v28 = vadd.f32 %v752_v26, %v578_v27 }
 0x204   : > { %976 = vtanh.f32 %v586_v28 }
 0x20e   : > { %v977_v29 = vpop.eup %976 }
 0x20f   : > { %595 = vperm.xlu0 %973, %v977_v29  }
 0x210   : > { %1063 = shalt.err (!%p1060_p1)
}
 0x211   : > { %s1064_s22 = scalar_lea.hbm %s1517_s6, 640 }
 0x212   : > { %p1065_p2 = scmp.ne.s32.totalorder %s1517_s6, %s1064_s22  ;;  %p1070_p12 = scmp.lt.u32.totalorder %s1064_s22, %s1517_s6 }
 0x214   : > { %p1066_p4 = pnand %p1065_p2, %p925_p10 }
 0x216   : > { %p1067_p6 = pneg %p1066_p4 }
 0x218   : > { %p1072_p13 = pnand %p1070_p12, %p1067_p6 }
 0x21a   : > { %1075 = shalt.err (!%p1072_p13)
}
 0x21b   : > { %s1163_s28 = smov 128   ;;  %s1164_s15 = smov 8   ;;  %v588_v30 = vlaneseq  ;;  %v590_v32 = vstv %s1228_s9  ;;  %v592_v33 = vld [vmem:[#allocation11] sm:$0xff] }
 0x21c   : > { %910 = dma.vmem_to_hbm [thread:$0]  (%p925_p10), %s607_s27, 640, %s1517_s6, [#allocation7], %s1163_s28, %s1163_s28, %s1164_s15  }
 0x21d   : > { %v589_v31 = vand.u32 127, %v588_v30  ;;  %s1165_s17 = smov [#allocation11]  }
 0x21e   : > { %s620_s18 = sshll.u32 %s1165_s17, 4  ;;  %s621_s18 = int_to_ptr.vmem [resolvable:$true] %s620_s18 }
 0x21f   : > { %vm591_vm1 = vcmp.eq.s32.totalorder %v589_v31, %v590_v32  ;;  %s1076_s25 = scalar_lea.vmem %s621_s18, 128  ;;  %p1083_p8 = scmp.lt.s32.totalorder %s621_s18, %s621_s18 }
 0x220   : > { %p1077_p3 = scmp.ne.s32.totalorder %s621_s18, %s1076_s25  ;;  %p1084_p5 = scmp.lt.s32.totalorder %s1076_s25, %s1076_s25 }
 0x222   : > { %p1078_p11 = pnand %p1077_p3, %p925_p10  ;;  %p1085_p9 = por %p1084_p5, %p1083_p8 }
 0x224   : > { %p1079_p7 = pneg %p1078_p11 }
 0x226   : > { %p1086_p0 = pnand %p1085_p9, %p1079_p7 }
 0x28e   : > { %v596_v34 = vpop.permute.xlu0 %595 }
 0x28f   : > { %v598_v35 = vsel %vm591_vm1, %v596_v34, %v592_v33 }
 0x290   : > { %599 = vst [vmem:[#allocation11] sm:$0xff] %v598_v35 }
 0x291   : > { %1089 = shalt.err (!%p1086_p0)
}
 0x292   : > { %s1090_s21 = scalar_lea.hbm %s1518_s7, 128 }
 0x293   : > { %p1091_p1 = scmp.ne.s32.totalorder %s1518_s7, %s1090_s21  ;;  %p1096_p6 = scmp.lt.u32.totalorder %s1090_s21, %s1518_s7 }
 0x295   : > { %p1092_p2 = pnand %p1091_p1, %p925_p10 }
 0x297   : > { %p1093_p4 = pneg %p1092_p2 }
 0x299   : > { %p1098_p12 = pnand %p1096_p6, %p1093_p4 }
 0x29b   : > { %1101 = shalt.err (!%p1098_p12)
}
 0x29c   : > { %912 = dma.vmem_to_hbm [thread:$0]  (%p925_p10), %s621_s18, 128, %s1518_s7, [#allocation12]  }
 0x29d   : > { %1129 = dma.done.wait (%p925_p10), [#allocation7], 640  }
 0x29e   : > { %1131 = vsyncadd (%p925_p10), [#allocation7], 4294966656 }
 0x29f   : > { %1133 = dma.done.wait (%p925_p10), [#allocation12], 128  }
 0x2a0   : > { %1135 = vsyncadd (%p925_p10), [#allocation12], 4294967168 }
 0x2a1 PF: > { %p29_p13 = scmp.ge.s32.totalorder %s1231_s10, 6   ;;  %s1526_s0 = smov %s1142_s29 }
 0x2a2   : > { %s1527_s29 = smov %s1146_s30  ;;  %s1528_s30 = smov %s1241_s13 }
 0x2a3   : > { %s1529_s8 = smov %s1231_s10  ;;  %31 = sbr.rel (!%p29_p13) target bundleno = 22 (0x16), region = 114 }
 0x2aa   :  { %637 = vsyncpa [#allocation6], 1 }
 0x2ab   :  { %639 = vsyncpa [#allocation6 + $0x1], 1 }
 0x2ac   :  { %640 = vsyncpa [#allocation9], 1 }
 0x2ad   :  { %642 = vsyncpa [#allocation9 + $0x1], 1 }
 0x2ae   :  { %643 = vsyncpa [#allocation7], 1 }
 0x2af   :  { %645 = vsyncpa [#allocation7 + $0x1], 1 }
 0x2b0   :  { %646 = vsyncpa [#allocation12], 1 }

</bundles_post_ra>
